<compile_context>
chip_gen: v6e
topology: v6e:2x2x1
jax: 0.10.0
libtpu: 0.0.40
codegen_flags: <defaults>
</compile_context>

<pallas_src>
import functools

import jax
import jax.numpy as jnp
import numpy as np
from jax import lax
from jax.experimental import pallas as pl
from jax.experimental.pallas import tpu as pltpu

BN_EPS = 1e-5
_LANE = 128


def _spatial_attention_kernel(params_ref, x_ref, pooled_ref, map_ref, *,
                              hw, hw_blk, inv_hw, need_mask):
    """One (batch-block, spatial-block) tile.

    params_ref : SMEM (3,) f32 = [w_max*bn_s, w_avg*bn_s/C, conv_b*bn_s+bn_shift]
    x_ref      : VMEM (b_blk, C, hw_blk) f32   (lane-dense spatial)
    pooled_ref : VMEM (b_blk, 1, 1, C)   f32   partial spatial mean (pre-scaled)
    map_ref    : VMEM (b_blk, C, hw_blk) f32   x * weight_map
    """
    x = x_ref[...]                                    # (b_blk, C, hw_blk)

    if need_mask:
        # Ragged tail spatial block: lanes past HW hold garbage from the
        # clipped input DMA.  Zero them once; the map writeback past HW is
        # dropped by Pallas, and zeros keep the pooled sum exact.
        s = pl.program_id(1)
        pos = s * hw_blk + lax.broadcasted_iota(jnp.int32, (1, 1, hw_blk), 2)
        x = jnp.where(pos < hw, x, 0.0)

    # Channel-wise max / sum pooling (torch.max(x,1), torch.mean(x,1)).
    # C is the sublane axis -> XLU sublane reduce; kernel is HBM bound so free.
    mx = jnp.max(x, axis=1, keepdims=True)            # (b_blk, 1, hw_blk)
    sm = jnp.sum(x, axis=1, keepdims=True)            # (b_blk, 1, hw_blk)

    w_max = params_ref[0]
    w_sum = params_ref[1]                             # already includes 1/C
    bias = params_ref[2]                              # conv bias + BN folded

    # 1x1 Conv2d(2->1) + BatchNorm2d(1) folded to one affine, then ReLU.
    fmap = w_max * mx + w_sum * sm + bias
    fmap = jnp.maximum(fmap, 0.0)
    # Sigmoid via the exact tanh identity: stays on the EUP slot (no divide).
    weight_map = 0.5 * (1.0 + jnp.tanh(0.5 * fmap))   # (b_blk, 1, hw_blk)

    y = x * weight_map                                # (b_blk, C, hw_blk)
    map_ref[...] = y

    # Partial spatial mean for this block (masked lanes are exactly zero).
    pooled = jnp.sum(y, axis=2) * inv_hw              # (b_blk, C)
    pooled_ref[:, 0, 0, :] = pooled


def _largest_divisor_leq(n, cap):
    cap = max(1, min(n, cap))
    for d in range(cap, 0, -1):
        if n % d == 0:
            return d
    return 1


def _choose_blocks(B, C, HW, target_bytes):
    """Pick (b_blk, hw_blk, n_s) so the x tile is ~target_bytes, hw_blk is a
    multiple of 128 (or the full HW), and the grid has >= 2 blocks whenever the
    problem allows (feeds both v7x TensorCores; costs <= 1 extra step on 1-TC
    v5e/v6e)."""
    hw_pad = pl.cdiv(HW, _LANE) * _LANE
    # Largest 128-multiple spatial block whose (1, C, hw_blk) tile fits target.
    cap_blk = max(_LANE, (target_bytes // (C * 4)) // _LANE * _LANE)
    hw_blk = min(cap_blk, hw_pad)
    if hw_blk >= HW:
        hw_blk = HW                     # single full-extent spatial block
    n_s = pl.cdiv(HW, hw_blk)

    if n_s == 1:
        # Spatial fits in one block: grow the batch block to fill the target.
        b_cap = max(1, target_bytes // (C * hw_blk * 4))
        b_blk = _largest_divisor_leq(B, b_cap)
    else:
        b_blk = 1

    # Guarantee >= 2 grid blocks when possible (v7x megacore).
    if (B // b_blk) * n_s < 2:
        if B >= 2:
            b_blk = _largest_divisor_leq(B, B // 2)
        elif HW > _LANE:
            hw_blk = pl.cdiv(pl.cdiv(HW, _LANE), 2) * _LANE
            n_s = pl.cdiv(HW, hw_blk)
    return b_blk, hw_blk, n_s


def spatial_attention(x, conv_w, conv_b, bn_gamma, bn_beta, bn_mean, bn_var,
                      *, tile_target_bytes=4 << 20):
    """x: (B, H, W, C) float32.  Returns (out (B, C), x*weight_map (B, C, H, W))."""
    B, H, W, C = x.shape
    HW = H * W

    # torch `x.view(B, C, H, W)` is a flat reinterpretation -> free reshape.
    x_r = jnp.reshape(x, (B, C, HW))

    # Fold Conv2d(2->1,1x1) + BatchNorm2d(1) (inference stats) into 3 scalars;
    # the channel mean becomes a channel sum weighted by w_avg/C.
    bn_scale = bn_gamma / jnp.sqrt(bn_var + BN_EPS)
    bn_shift = bn_beta - bn_mean * bn_scale
    params = jnp.stack([
        conv_w[0, 0, 0, 0] * bn_scale[0],
        conv_w[0, 1, 0, 0] * bn_scale[0] / C,
        conv_b[0] * bn_scale[0] + bn_shift[0],
    ]).astype(jnp.float32)

    b_blk, hw_blk, n_s = _choose_blocks(B, C, HW, tile_target_bytes)
    n_b = B // b_blk
    need_mask = (n_s > 1) and (HW % hw_blk != 0)

    kernel = functools.partial(
        _spatial_attention_kernel,
        hw=HW, hw_blk=hw_blk, inv_hw=1.0 / float(HW), need_mask=need_mask)

    pooled_parts, map_flat = pl.pallas_call(
        kernel,
        out_shape=(
            jax.ShapeDtypeStruct((B, n_s, 1, C), jnp.float32),   # partial means
            jax.ShapeDtypeStruct((B, C, HW), jnp.float32),        # x * weight_map
        ),
        grid=(n_b, n_s),
        in_specs=[
            pl.BlockSpec(memory_space=pltpu.MemorySpace.SMEM),
            pl.BlockSpec((b_blk, C, hw_blk), lambda b, s: (b, 0, s)),
        ],
        out_specs=(
            pl.BlockSpec((b_blk, 1, 1, C), lambda b, s: (b, s, 0, 0)),
            pl.BlockSpec((b_blk, C, hw_blk), lambda b, s: (b, 0, s)),
        ),
        compiler_params=pltpu.CompilerParams(
            dimension_semantics=("parallel", "parallel"),
            vmem_limit_bytes=48 * 1024 * 1024,
        ),
    )(params, x_r)

    out = jnp.sum(pooled_parts, axis=(1, 2))          # (B, C) — tiny reduce
    wmap = jnp.reshape(map_flat, (B, C, H, W))        # free reshape
    return out, wmap


def _reference(x, conv_w, conv_b, bn_gamma, bn_beta, bn_mean, bn_var):
    B, H, W, C = x.shape
    xr = jnp.reshape(x, (B, C, H, W))
    mx = jnp.max(xr, axis=1, keepdims=True)
    avg = jnp.mean(xr, axis=1, keepdims=True)
    combined = jnp.concatenate([mx, avg], axis=1)                  # (B, 2, H, W)
    fmap = jnp.einsum("bchw,oc->bohw", combined,
                      conv_w.reshape(1, 2)) + conv_b.reshape(1, 1, 1, 1)
    fmap = bn_gamma.reshape(1, 1, 1, 1) * (fmap - bn_mean.reshape(1, 1, 1, 1)) \
        / jnp.sqrt(bn_var.reshape(1, 1, 1, 1) + BN_EPS) + bn_beta.reshape(1, 1, 1, 1)
    fmap = jnp.maximum(fmap, 0.0)
    wm = jax.nn.sigmoid(fmap)
    y = xr * wm
    return y.mean(axis=(2, 3)), y


def _run_case(key, B, H, W, C, **kw):
    k_x, k_w, k_b = jax.random.split(key, 3)
    x = jax.random.normal(k_x, (B, H, W, C), dtype=jnp.float32)
    conv_w = jax.random.normal(k_w, (1, 2, 1, 1), dtype=jnp.float32) * 0.5
    conv_b = jax.random.normal(k_b, (1,), dtype=jnp.float32) * 0.1
    bn_gamma = jnp.ones((1,), jnp.float32)
    bn_beta = jnp.zeros((1,), jnp.float32)
    bn_mean = jnp.zeros((1,), jnp.float32)
    bn_var = jnp.ones((1,), jnp.float32)

    out, wmap = spatial_attention(x, conv_w, conv_b, bn_gamma, bn_beta,
                                  bn_mean, bn_var, **kw)
    jax.block_until_ready((out, wmap))

    ref_out, ref_map = _reference(x, conv_w, conv_b, bn_gamma, bn_beta,
                                  bn_mean, bn_var)
    np.testing.assert_allclose(np.asarray(out), np.asarray(ref_out),
                               rtol=1e-5, atol=1e-5)
    np.testing.assert_allclose(np.asarray(wmap), np.asarray(ref_map),
                               rtol=1e-5, atol=1e-5)


if __name__ == "__main__":
    key = jax.random.PRNGKey(0)
    k1, k2, k3 = jax.random.split(key, 3)

    # Primary case: B=2, H=W=16, C=4 — batch-parallel grid.
    _run_case(k1, B=2, H=16, W=16, C=4)
    # B=1: spatial axis is split so the grid still has 2 parallel blocks.
    _run_case(k2, B=1, H=16, W=16, C=8)
    # HW not a multiple of the spatial block: ragged tail handled by the
    # in-kernel lane mask (no wrapper pad/slice).  Tiny tile target forces it.
    _run_case(k3, B=1, H=20, W=20, C=8, tile_target_bytes=8192)

    print("KERNEL_OK")
</pallas_src>

<mosaic_0001>
module attributes {stable_mosaic.version = 11 : i64} {
  func.func @_spatial_attention_kernel(%arg0: i32, %arg1: i32, %arg2: memref<3xf32, #tpu.memory_space<smem>>, %arg3: memref<1x4x256xf32, #tpu.memory_space<vmem>>, %arg4: memref<1x1x1x4xf32, #tpu.memory_space<vmem>>, %arg5: memref<1x4x256xf32, #tpu.memory_space<vmem>>) attributes {dimension_semantics = [#tpu.dimension_semantics<parallel>, #tpu.dimension_semantics<parallel>], iteration_bounds = array<i64: 2, 1>, scalar_prefetch = 0 : i64, scratch_operands = 0 : i64, tpu.core_type = #tpu.core_type<tc>, window_params = [{transform_indices = @transform_0, window_bounds = array<i64: 3>}, {transform_indices = @transform_1, window_bounds = array<i64: 1, 4, 256>}, {transform_indices = @transform_2, window_bounds = array<i64: 1, 1, 1, 4>}, {transform_indices = @transform_3, window_bounds = array<i64: 1, 4, 256>}]} {
    %c0 = arith.constant 0 : index
    %c0_0 = arith.constant 0 : index
    %c0_1 = arith.constant 0 : index
    %0 = vector.load %arg3[%c0, %c0_0, %c0_1] : memref<1x4x256xf32, #tpu.memory_space<vmem>>, vector<1x4x256xf32>
    %cst = arith.constant dense<0xFF800000> : vector<1x256xf32>
    %1 = vector.multi_reduction <maximumf>, %0, %cst [1] : vector<1x4x256xf32> to vector<1x256xf32>
    %2 = vector.shape_cast %1 : vector<1x256xf32> to vector<1x1x256xf32>
    %cst_2 = arith.constant dense<0.000000e+00> : vector<1x256xf32>
    %3 = vector.multi_reduction <add>, %0, %cst_2 [1] : vector<1x4x256xf32> to vector<1x256xf32>
    %4 = vector.shape_cast %3 : vector<1x256xf32> to vector<1x1x256xf32>
    %c0_3 = arith.constant 0 : index
    %5 = memref.load %arg2[%c0_3] : memref<3xf32, #tpu.memory_space<smem>>
    %c1 = arith.constant 1 : index
    %6 = memref.load %arg2[%c1] : memref<3xf32, #tpu.memory_space<smem>>
    %c2 = arith.constant 2 : index
    %7 = memref.load %arg2[%c2] : memref<3xf32, #tpu.memory_space<smem>>
    %8 = vector.broadcast %5 : f32 to vector<1x1x256xf32>
    %9 = arith.mulf %8, %2 : vector<1x1x256xf32>
    %10 = vector.broadcast %6 : f32 to vector<1x1x256xf32>
    %11 = arith.mulf %10, %4 : vector<1x1x256xf32>
    %12 = arith.addf %9, %11 : vector<1x1x256xf32>
    %13 = vector.broadcast %7 : f32 to vector<1x1x256xf32>
    %14 = arith.addf %12, %13 : vector<1x1x256xf32>
    %cst_4 = arith.constant 0.000000e+00 : f32
    %15 = vector.broadcast %cst_4 : f32 to vector<1x1x256xf32>
    %16 = arith.maximumf %14, %15 : vector<1x1x256xf32>
    %cst_5 = arith.constant 5.000000e-01 : f32
    %17 = vector.broadcast %cst_5 : f32 to vector<1x1x256xf32>
    %18 = arith.mulf %17, %16 : vector<1x1x256xf32>
    %19 = math.tanh %18 : vector<1x1x256xf32>
    %cst_6 = arith.constant 1.000000e+00 : f32
    %20 = vector.broadcast %cst_6 : f32 to vector<1x1x256xf32>
    %21 = arith.addf %20, %19 : vector<1x1x256xf32>
    %cst_7 = arith.constant 5.000000e-01 : f32
    %22 = vector.broadcast %cst_7 : f32 to vector<1x1x256xf32>
    %23 = arith.mulf %22, %21 : vector<1x1x256xf32>
    %24 = vector.broadcast %23 : vector<1x1x256xf32> to vector<1x4x256xf32>
    %25 = arith.mulf %0, %24 : vector<1x4x256xf32>
    %c0_8 = arith.constant 0 : index
    %c0_9 = arith.constant 0 : index
    %c0_10 = arith.constant 0 : index
    %26 = vector.load %arg5[%c0_8, %c0_9, %c0_10] : memref<1x4x256xf32, #tpu.memory_space<vmem>>, vector<1x4x256xf32>
    tpu.vector_store %arg5[%c0_8, %c0_9, %c0_10], %25 {strides = array<i32>} : memref<1x4x256xf32, #tpu.memory_space<vmem>>, vector<1x4x256xf32>,
    %cst_11 = arith.constant dense<0.000000e+00> : vector<1x4xf32>
    %27 = vector.multi_reduction <add>, %25, %cst_11 [2] : vector<1x4x256xf32> to vector<1x4xf32>
    %cst_12 = arith.constant 3.906250e-03 : f32
    %28 = vector.broadcast %cst_12 : f32 to vector<1x4xf32>
    %29 = arith.mulf %27, %28 : vector<1x4xf32>
    %c0_13 = arith.constant 0 : index
    %c0_14 = arith.constant 0 : index
    %c0_15 = arith.constant 0 : index
    %c0_16 = arith.constant 0 : index
    %30 = vector.load %arg4[%c0_13, %c0_14, %c0_15, %c0_16] : memref<1x1x1x4xf32, #tpu.memory_space<vmem>>, vector<1x1x1x4xf32>
    %31 = vector.shape_cast %30 : vector<1x1x1x4xf32> to vector<1x4xf32>
    %32 = vector.shape_cast %29 : vector<1x4xf32> to vector<1x1x1x4xf32>
    tpu.vector_store %arg4[%c0_13, %c0_14, %c0_15, %c0_16], %32 {strides = array<i32>} : memref<1x1x1x4xf32, #tpu.memory_space<vmem>>, vector<1x1x1x4xf32>,
    return
  }
  func.func @transform_0(%arg0: i32, %arg1: i32) -> i32 {
    %c0_i32 = arith.constant 0 : i32
    %c0_i32_0 = arith.constant 0 : i32
    return %c0_i32 : i32
  }
  func.func @transform_1(%arg0: i32, %arg1: i32) -> (i32, i32, i32) {
    %c0_i32 = arith.constant 0 : i32
    %c0_i32_0 = arith.constant 0 : i32
    return %arg0, %c0_i32, %arg1 : i32, i32, i32
  }
  func.func @transform_2(%arg0: i32, %arg1: i32) -> (i32, i32, i32, i32) {
    %c0_i32 = arith.constant 0 : i32
    %c0_i32_0 = arith.constant 0 : i32
    %c0_i32_1 = arith.constant 0 : i32
    return %arg0, %arg1, %c0_i32, %c0_i32_0 : i32, i32, i32, i32
  }
  func.func @transform_3(%arg0: i32, %arg1: i32) -> (i32, i32, i32) {
    %c0_i32 = arith.constant 0 : i32
    %c0_i32_0 = arith.constant 0 : i32
    return %arg0, %c0_i32, %arg1 : i32, i32, i32
  }
}

</mosaic_0001>

<bundles_post_ra>
// kernel: tpu_custom_call.1
= control target key start
LH: loop header
LB: loop body
LE: loop exit
PB: predicated region body
PF: predicated region fallthrough
CT: control target
= control target key end

     0   :  { %9 = vsyncpa [#allocation5], 0  ;;  %s947_s0 = inlined_call_operand.hbm [shape: f32[3], index: 0, kind: input, shape index: {}]   ;;  %s948_s1 = inlined_call_operand.hbm [shape: f32[2,4,256], index: 1, kind: input, shape index: {}]   ;;  %s949_s2 = inlined_call_operand.hbm [shape: f32[2,1,1,4], index: 2, kind: output, shape index: {0}]   ;;  %s950_s3 = inlined_call_operand.hbm [shape: f32[2,4,256], index: 3, kind: output, shape index: {1}]  }
   0x1   :  { %10 = vsyncpa [#allocation3], 0 }
   0x2   :  { %12 = vsyncpa [#allocation3 + $0x1], 0 }
   0x3   :  { %13 = vsyncpa [#allocation4], 0 }
   0x4   :  { %15 = vsyncpa [#allocation4 + $0x1], 0 }
   0x5   :  { %16 = vsyncpa [#allocation9], 0 }
   0x6   :  { %18 = vsyncpa [#allocation9 + $0x1], 0  ;;  %s757_s12 = smov 0   ;;  %s759_s13 = smov 0  }
   0x7   :  { %s761_s14 = smov 0   ;;  %s763_s15 = smov 0  }
   0x8   :  { %s765_s16 = smov 0   ;;  %s767_s17 = smov 0  }
   0x9 LB: > { %s473_s18 = sadd.s32 4294967295, %s731_s17   ;;  %s474_s19 = sadd.s32 4294967294, %s731_s17   ;;  %s731_s17 = sphi %s767_s17, %s24_s17   ;;  %s727_s16 = sphi %s765_s16, %s967_s16   ;;  %s723_s15 = sphi %s763_s15, %s966_s15   ;;  %s719_s14 = sphi %s761_s14, %s965_s14   ;;  %s715_s13 = sphi %s759_s13, %s964_s13   ;;  %s711_s12 = sphi %s757_s12, %s963_s12  }
   0xa   : > { %p79_p0 = scmp.ne.s32.totalorder %s715_s13, %s711_s12  ;;  %p791_p1 = scmp.eq.s32.totalorder %s473_s18, 0 }
   0xb   : > { %p795_p2 = scmp.eq.s32.totalorder %s473_s18, 1  ;;  %p111_p3 = scmp.eq.s32.totalorder %s474_s19, 1 }
   0xc   : > { %p801_p4 = por %p791_p1, %p79_p0  ;;  %p475_p5 = scmp.ge.s32.totalorder %s731_s17, 1 }
   0xd   : > { %p806_p6 = por %p111_p3, %p79_p0  ;;  %p146_p7 = scmp.lt.s32.totalorder %s731_s17, 3 }
   0xe   : > { %s36_s25 = sadd.s32 1, %s727_s16  ;;  %s66_s26 = sadd.s32 1, %s719_s14 }
   0xf   : > { %s955_s23 = scalar_select %p806_p6, 1, 0 }
  0x10   : > { %p811_p8 = pnand %p475_p5, %p146_p7  ;;  %p38_p12 = scmp.ge.s32.totalorder %s36_s25, 2 }
  0x11   : > { %p73_p13 = scmp.ne.s32.totalorder %s719_s14, %s715_s13  ;;  %p74_p0 = scmp.eq.s32.totalorder %s731_s17, 0 }
  0x12   : > { %p505_p10 = pneg %p811_p8  ;;  %s733_s27 = smov [#allocation2]  }
  0x13   : > { %s969_s25 = smov (%p38_p12, %s36_s25), 0  ;;  %p830_p3 = por %p74_p0, %p73_p13 }
  0x14   : > { %p506_p11 = pnand %p505_p10, %p791_p1  ;;  %p836_p5 = por %p795_p2, %p73_p13 }
  0x15   : > { %s61_s5 = ssub.s32 %s727_s16, %s969_s25  ;;  %p521_p7 = scmp.lt.s32.totalorder %s731_s17, 2 }
  0x16   : > { %508 = dma.hbm_to_smem (!%p506_p11), %s947_s0, 16, %s733_s27, [#allocation5]  }
  0x17   : > { %s958_s4 = scalar_select %p836_p5, 1, 0 }
  0x18   : > { %p64_p10 = scmp.eq.s32.totalorder %s61_s5, 0  ;;  %s168_s6 = sand.u32 1, %s719_s14  }
  0x19   : > { %s478_s7 = sshll.u32 %s168_s6, 3  ;;  %s493_s9 = sshll.u32 %s727_s16, 7 }
  0x1a   : > { %s845_s8 = scalar_select %p64_p10, %s719_s14, %s66_s26  }
  0x1b   : > { %s180_s18 = scalar_lea.hbm %s948_s1, %s493_s9  ;;  %s172_s19 = scalar_lea.vmem [#allocation6], %s478_s7 }
  0x1c   : > { %s182_s27 = sshll.u32 %s172_s19, 4  ;;  %p853_p2 = pnand %p521_p7, %p830_p3  ;;  %s183_s27 = int_to_ptr.vmem [resolvable:$true] %s182_s27 }
  0x1d   : > { %s169_s28 = scalar_lea.sflag [#allocation3], %s168_s6  ;;  %s602_s29 = scalar_lea.vmem %s183_s27, 128 }
  0x1e   : > { %p591_p11 = pneg %p853_p2  ;;  %p603_p12 = scmp.ne.s32.totalorder %s183_s27, %s602_s29 }
  0x1f   : > { %s734_s26 = smov [#allocation6]  }
  0x20   : > { %p605_p13 = pnand %p603_p12, %p591_p11  ;;  %s607_s5 = sshll.u32 %s734_s26, 4  ;;  %s608_s5 = int_to_ptr.vmem [resolvable:$false] %s607_s5 }
  0x21   : > { %s609_s9 = scalar_lea.vmem %s608_s5, 256  ;;  %p610_p10 = scmp.lt.s32.totalorder %s183_s27, %s608_s5 }
  0x22   : > { %p606_p0 = pneg %p605_p13  ;;  %p611_p9 = scmp.lt.s32.totalorder %s609_s9, %s602_s29 }
  0x24   : > { %p612_p6 = por %p611_p9, %p610_p10 }
  0x26   : > { %p613_p5 = pnand %p612_p6, %p606_p0 }
  0x28   : > { %616 = shalt.err (!%p613_p5)
}
  0x29   : > { %512 = dma.hbm_to_vmem [thread:$0]  (!%p853_p2), %s180_s18, 128, %s183_s27, %s169_s28  }
  0x2a   : > { %191 = sbr.rel (%p811_p8) target bundleno = 262 (0x106), region = 28 }
  0x2f   : > { %694 = dma.done.wait (%p791_p1), [#allocation5], 16  }
  0x30   : > { %696 = vsyncadd (%p791_p1), [#allocation5], 4294967280  ;;  %s868_s30 = sand.u32 1, %s715_s13  }
  0x31   : > { %s483_s6 = sshll.u32 %s868_s30, 3  ;;  %s198_s7 = scalar_lea.sflag [#allocation3], %s868_s30 }
  0x32   : > { %s201_s10 = scalar_lea.vmem [#allocation6], %s483_s6 }
  0x33   : > { %698 = dma.done.wait (%p801_p4), %s198_s7, 128  }
  0x34   : > { %700 = vsyncadd (%p801_p4), %s198_s7, 4294967168 }
  0x35   : > { %206 = sfence }
  0x36   : > { %v231_v0 = vld [vmem:[%s201_s10] sm:$0xff]  ;;  %vm235_vm0 = vcmask 1043456   ;;  %s880_s20 = sld [smem:[#allocation2]]  ;;  %s228_s11 = scalar_lea.vmem [#allocation8], %s483_s6 }
  0x37   : > { %v233_v1 = vcombine.high %v231_v0, %v231_v0  ;;  %v236_v2 = vsel %vm235_vm0, %v231_v0, -inf  ;;  %v250_v3 = vsel %vm235_vm0, %v231_v0, 0.0  ;;  %s485_s24 = sld [smem:[#allocation2 + $0x1]]  ;;  %s494_s18 = sshll.u32 %s723_s15, 7 }
  0x38   : > { %v237_v4 = vrot.slane %v236_v2, 4  ;;  %v251_v5 = vrot.slane %v250_v3, 4  ;;  %s486_s22 = sld [smem:[#allocation2 + $0x2]]  ;;  %s348_s19 = sshll.u32 %s228_s11, 4  ;;  %s349_s19 = int_to_ptr.vmem [resolvable:$true] %s348_s19 }
  0x39   : > { %v243_v6 = vsel %vm235_vm0, %v233_v1, -inf  ;;  %v257_v7 = vsel %vm235_vm0, %v233_v1, 0.0  ;;  %s346_s28 = scalar_lea.hbm %s950_s3, %s494_s18  ;;  %s318_s29 = scalar_lea.sflag [#allocation9], %s868_s30 }
  0x3a   : > { %v238_v8 = vmax.f32 %v236_v2, %v237_v4  ;;  %v244_v9 = vrot.slane %v243_v6, 4  ;;  %v252_v10 = vadd.f32 %v251_v5, %v250_v3  ;;  %v258_v11 = vrot.slane %v257_v7, 4  ;;  %s617_s26 = scalar_lea.vmem %s349_s19, 128  ;;  %p960_p4 = scmp.ne.s32.totalorder %s958_s4, 0 }
  0x3b   : > { %p618_p1 = scmp.ne.s32.totalorder %s349_s19, %s617_s26  ;;  %s735_s5 = smov [#allocation8]  }
  0x3c   : > { %v239_v12 = vrot.slane %v238_v8, 2  ;;  %v245_v13 = vmax.f32 %v243_v6, %v244_v9  ;;  %v253_v14 = vrot.slane %v252_v10, 2  ;;  %v259_v15 = vadd.f32 %v258_v11, %v257_v7  ;;  %s621_s9 = sshll.u32 %s735_s5, 4  ;;  %s622_s9 = int_to_ptr.vmem [resolvable:$false] %s621_s9 }
  0x3d   : > { %v267_v24 = vstv %s880_s20  ;;  %v270_v25 = vstv %s485_s24  ;;  %p619_p6 = pnand %p618_p1, %p960_p4  ;;  %s623_s7 = scalar_lea.vmem %s622_s9, 256 }
  0x3e   : > { %v240_v16 = vmax.f32 %v238_v8, %v239_v12  ;;  %v246_v17 = vrot.slane %v245_v13, 2  ;;  %v254_v18 = vadd.f32 %v253_v14, %v252_v10  ;;  %v260_v19 = vrot.slane %v259_v15, 2  ;;  %p624_p9 = scmp.lt.s32.totalorder %s349_s19, %s622_s9  ;;  %p625_p3 = scmp.lt.s32.totalorder %s623_s7, %s617_s26 }
  0x3f   : > { %v275_v34 = vstv %s486_s22  ;;  %p620_p8 = pneg %p619_p6 }
  0x40   : > { %v241_v20 = vrot.slane %v240_v16, 1  ;;  %v247_v21 = vmax.f32 %v245_v13, %v246_v17  ;;  %v255_v22 = vrot.slane %v254_v18, 1  ;;  %v261_v23 = vadd.f32 %v260_v19, %v259_v15  ;;  %p626_p5 = por %p625_p3, %p624_p9 }
  0x42   : > { %v242_v26 = vmax.f32 %v240_v16, %v241_v20  ;;  %v248_v27 = vrot.slane %v247_v21, 1  ;;  %v256_v28 = vadd.f32 %v255_v22, %v254_v18  ;;  %v262_v29 = vrot.slane %v261_v23, 1  ;;  %p627_p7 = pnand %p626_p5, %p620_p8 }
  0x44   : > { %v249_v30 = vmax.f32 %v247_v21, %v248_v27  ;;  %v263_v31 = vadd.f32 %v262_v29, %v261_v23  ;;  %v268_v32 = vmul.f32 %v267_v24, %v242_v26  ;;  %v271_v33 = vmul.f32 %v270_v25, %v256_v28 }
  0x46   : > { %v269_v35 = vmul.f32 %v267_v24, %v249_v30  ;;  %v272_v36 = vmul.f32 %v270_v25, %v263_v31  ;;  %v273_v37 = vadd.f32 %v271_v33, %v268_v32 }
  0x48   : > { %v274_v38 = vadd.f32 %v272_v36, %v269_v35  ;;  %v276_v39 = vadd.f32 %v275_v34, %v273_v37 }
  0x4a   : > { %v277_v40 = vadd.f32 %v275_v34, %v274_v38  ;;  %v278_v41 = vmax.f32 %v276_v39, 0.0 }
  0x4c   : > { %v279_v42 = vmax.f32 %v277_v40, 0.0  ;;  %v280_v43 = vmul.f32 0.5, %v278_v41 }
  0x4e   : > { %v281_v44 = vmul.f32 0.5, %v279_v42  ;;  %574 = vtanh.f32 %v280_v43 }
  0x50   : > { %576 = vtanh.f32 %v281_v44 }
  0x5b   : > { %v575_v45 = vpop.eup %574 }
  0x5c   : > { %v284_v46 = vadd.f32 1.0, %v575_v45 }
  0x5d   : > { %v577_v47 = vpop.eup %576 }
  0x5e   : > { %v285_v48 = vadd.f32 1.0, %v577_v47  ;;  %v286_v49 = vmul.f32 0.5, %v284_v46 }
  0x60   : > { %v287_v50 = vmul.f32 0.5, %v285_v48 }
  0x62   : > { %v290_v51 = vcombine.low %v286_v49, %v287_v50 }
  0x64   : > { %v292_v52 = vmul.f32 %v290_v51, %v231_v0 }
  0x66   : > { %v295_v53 = vcombine.high %v292_v52, %v292_v52  ;;  %v297_v54 = vsel %vm235_vm0, %v292_v52, 0.0  ;;  %293 = vst [vmem:[%s228_s11] sm:$0xff] %v292_v52 }
  0x68   : > { %v298_v55 = vsel %vm235_vm0, %v295_v53, 0.0 }
  0x69   : > { %v299_v56 = vadd.f32 %v298_v55, %v297_v54 }
  0x6b   : > { %300 = vadd.xlane.f32.xlu0 %v299_v56 }
  0x6c   : > { %630 = shalt.err (!%p627_p7)
}
  0x6d   : > { %s631_s6 = scalar_lea.hbm %s346_s28, 128  ;;  %s635_s24 = scalar_lea.hbm %s950_s3, 256 }
  0x6e   : > { %p632_p2 = scmp.ne.s32.totalorder %s346_s28, %s631_s6  ;;  %p636_p13 = scmp.lt.s32.totalorder %s346_s28, %s950_s3 }
  0x6f   : > { %p637_p0 = scmp.lt.s32.totalorder %s635_s24, %s631_s6 }
  0x70   : > { %p633_p11 = pnand %p632_p2, %p960_p4 }
  0x71   : > { %p638_p10 = por %p637_p0, %p636_p13 }
  0x72   : > { %p634_p12 = pneg %p633_p11 }
  0x74   : > { %p639_p1 = pnand %p638_p10, %p634_p12 }
  0x76   : > { %642 = shalt.err (!%p639_p1)
}
  0x77   : > { %502 = dma.vmem_to_hbm [thread:$0]  (%p960_p4), %s349_s19, 128, %s346_s28, %s318_s29   ;;  %v304_v57 = vlaneseq  ;;  %vm311_vm1 = vcmask 24576  }
  0x78   : > { %s488_s18 = sshll.u32 %s723_s15, 4  ;;  %s221_s27 = scalar_lea.vmem [#allocation7], %s868_s30 }
  0x79   : > { %v305_v58 = vand.u32 127, %v304_v57  ;;  %v307_v59 = vshrl.u32 %v304_v57, 7  ;;  %s332_s21 = sshll.u32 %s221_s27, 4  ;;  %s330_s9 = scalar_lea.hbm %s949_s2, %s488_s18  ;;  %s333_s21 = int_to_ptr.vmem [resolvable:$true] %s332_s21 }
  0x7a   : > { %s314_s7 = scalar_lea.sflag [#allocation4], %s868_s30  ;;  %s643_s19 = scalar_lea.vmem %s333_s21, 16 }
  0x7b   : > { %v308_v60 = vsub.s32 %v305_v58, %v307_v59  ;;  %p644_p6 = scmp.ne.s32.totalorder %s333_s21, %s643_s19  ;;  %s736_s28 = smov [#allocation7]  }
  0x7c   : > { %s647_s29 = sshll.u32 %s736_s28, 4  ;;  %s648_s29 = int_to_ptr.vmem [resolvable:$false] %s647_s29 }
  0x7d   : > { %p645_p8 = pnand %p644_p6, %p960_p4  ;;  %s649_s15 = scalar_lea.vmem %s648_s29, 32 }
  0x7e   : > { %p650_p3 = scmp.lt.s32.totalorder %s333_s21, %s648_s29  ;;  %p651_p5 = scmp.lt.s32.totalorder %s649_s15, %s643_s19 }
  0x7f   : > { %p646_p9 = pneg %p645_p8 }
  0x80   : > { %p652_p7 = por %p651_p5, %p650_p3 }
  0x82   : > { %p653_p2 = pnand %p652_p7, %p646_p9 }
  0xf4   : > { %v301_v61 = vpop.xlane.xlu0 %300 }
  0xf5   : > { %v302_v62 = vmul.f32 0.00390625, %v301_v61 }
  0xf7   : > { %v309_v63 = vrot.slane %v302_v62, %v308_v60 }
  0xf9   : > { %312 = vst.msk [vmem:[%s221_s27] sm:$0x1] %vm311_vm1, %v309_v63 }
  0xfa   : > { %656 = shalt.err (!%p653_p2)
}
  0xfb   : > { %s657_s6 = scalar_lea.hbm %s330_s9, 16  ;;  %s661_s20 = scalar_lea.hbm %s949_s2, 32 }
  0xfc   : > { %p658_p11 = scmp.ne.s32.totalorder %s330_s9, %s657_s6  ;;  %p662_p0 = scmp.lt.s32.totalorder %s330_s9, %s949_s2 }
  0xfd   : > { %p663_p10 = scmp.lt.s32.totalorder %s661_s20, %s657_s6 }
  0xfe   : > { %p659_p12 = pnand %p658_p11, %p960_p4 }
  0xff   : > { %p664_p1 = por %p663_p10, %p662_p0 }
 0x100   : > { %p660_p13 = pneg %p659_p12 }
 0x102   : > { %p665_p6 = pnand %p664_p1, %p660_p13 }
 0x104   : > { %668 = shalt.err (!%p665_p6)
}
 0x105   : > { %501 = dma.vmem_to_hbm [thread:$0]  (%p960_p4), %s333_s21, 16, %s330_s9, %s314_s7  }
 0x106 PF: > { %s360_s11 = sand.u32 1, %s711_s12   ;;  %p961_p8 = scmp.ne.s32.totalorder %s955_s23, 0 }
 0x107   : > { %p962_p9 = scmp.ge.s32.totalorder %s731_s17, 2  ;;  %s361_s18 = scalar_lea.sflag [#allocation4], %s360_s11 }
 0x109   : > { %p514_p3 = pnand %p962_p9, %p961_p8 }
 0x10b   : > { %p515_p5 = pneg %p514_p3 }
 0x10d   : > { %702 = dma.done.wait (%p515_p5), %s361_s18, 16  }
 0x10e   : > { %704 = vsyncadd (%p515_p5), %s361_s18, 4294967280  ;;  %s369_s27 = scalar_lea.sflag [#allocation9], %s360_s11 }
 0x10f   : > { %706 = dma.done.wait (%p515_p5), %s369_s27, 128  }
 0x110   : > { %708 = vsyncadd (%p515_p5), %s369_s27, 4294967168  ;;  %s24_s17 = sadd.s32 1, %s731_s17   ;;  %s963_s12 = smov %s715_s13 }
 0x111   : > { %p21_p7 = scmp.ge.s32.totalorder %s24_s17, 4   ;;  %s964_s13 = smov %s719_s14 }
 0x112   : > { %s965_s14 = smov %s845_s8  ;;  %s966_s15 = smov %s727_s16 }
 0x113   : > { %s967_s16 = smov %s969_s25  ;;  %23 = sbr.rel (!%p21_p7) target bundleno = 9 (0x9), region = 95 }
 0x118   :  { %374 = vsyncpa [#allocation3], 1 }
 0x119   :  { %376 = vsyncpa [#allocation3 + $0x1], 1 }
 0x11a   :  { %377 = vsyncpa [#allocation4], 1 }
 0x11b   :  { %379 = vsyncpa [#allocation4 + $0x1], 1 }
 0x11c   :  { %380 = vsyncpa [#allocation9], 1 }
 0x11d   :  { %382 = vsyncpa [#allocation9 + $0x1], 1 }
 0x11e   :  { %383 = vsyncpa [#allocation5], 1 }
 0x11f   :  { %385 = vsyncpa [#allocation5 + $0x1], 1 }

</bundles_post_ra>
